<compile_context>
chip_gen: v5e
topology: v5e:2x2
jax: 0.10.0
libtpu: 0.0.40
codegen_flags: <defaults>
</compile_context>

<pallas_src>
import math

import jax
import jax.numpy as jnp
from jax import lax
from jax.experimental import pallas as pl
from jax.experimental.pallas import tpu as pltpu

# murmur3 fmix32 constants as signed int32 two's-complement literals.
_M1 = -2048144789        # 0x85EBCA6B
_M2 = -1028477387        # 0xC2B2AE35
_GOLD = -1640531527      # 0x9E3779B9
_KEY_OFS = 0x7FB5D329    # fits in positive int32


def _srl(x, n):
    # logical (unsigned) right shift on int32
    return lax.shift_right_logical(x, jnp.int32(n))


def _fmix32(x):
    """murmur3 finalizer: int32 wrap-around arithmetic, strong avalanche."""
    x = x ^ _srl(x, 16)
    x = x * jnp.int32(_M1)
    x = x ^ _srl(x, 13)
    x = x * jnp.int32(_M2)
    x = x ^ _srl(x, 16)
    return x


def _randn_kernel(seed_ref, out_ref):
    # out_ref: (tb, 128) f32 tile of the lane-dense output slab.
    tb, lanes = out_ref.shape
    row0 = pl.program_id(0) * tb                       # global row offset of this tile

    rows = lax.broadcasted_iota(jnp.int32, (tb, lanes), 0) + row0
    cols = lax.broadcasted_iota(jnp.int32, (tb, lanes), 1)
    idx = rows * lanes + cols                          # globally unique element counter

    # fold the SMEM-prefetched seed into two counter streams per element
    key = seed_ref[0] * jnp.int32(_GOLD) + jnp.int32(_KEY_OFS)
    b1 = _fmix32((idx * 2) ^ key)
    b2 = _fmix32((idx * 2 + 1) ^ key)

    # top 24 bits -> uniforms: u1 in (0, 1], u2 in [0, 1)
    inv24 = jnp.float32(1.0 / 16777216.0)
    u1 = (_srl(b1, 8).astype(jnp.float32) + jnp.float32(1.0)) * inv24
    u2 = _srl(b2, 8).astype(jnp.float32) * inv24

    # Box-Muller -> N(0, 1); log/sqrt/cos ride the EUP slot, the store is an
    # unmasked 128-lane vst.
    r = jnp.sqrt(jnp.float32(-2.0) * jnp.log(u1))
    theta = jnp.float32(2.0 * math.pi) * u2
    out_ref[...] = r * jnp.cos(theta)


def noise_generator_forward(seed, batch_size, z_dim, *, row_block=512):
    """Fresh N(0,1) draw of shape (batch_size, z_dim) == NoiseGenerator.forward().

    `seed` is a (1,) int32 array, scalar-prefetched into SMEM.
    The learned `noise` parameter is intentionally NOT an input: its
    normalization in the reference forward() is computed and then discarded,
    so it has no effect on the returned value.
    """
    lanes = 128
    total = batch_size * z_dim
    rows = pl.cdiv(total, lanes)
    rows8 = ((rows + 7) // 8) * 8                      # sublane-align
    tb = min(((row_block + 7) // 8) * 8, rows8)        # block rows, multiple of 8
    rows_padded = pl.cdiv(rows8, tb) * tb
    grid = (rows_padded // tb,)

    slab = pl.pallas_call(
        _randn_kernel,
        out_shape=jax.ShapeDtypeStruct((rows_padded, lanes), jnp.float32),
        grid_spec=pltpu.PrefetchScalarGridSpec(
            num_scalar_prefetch=1,                     # seed -> SMEM
            grid=grid,
            in_specs=[],
            out_specs=pl.BlockSpec((tb, lanes), lambda i, s: (i, 0)),
        ),
        compiler_params=pltpu.CompilerParams(
            dimension_semantics=("parallel",)),        # megacore-shardable
    )(seed)
    return slab.reshape(-1)[:total].reshape(batch_size, z_dim)


if __name__ == "__main__":
    batch_size, z_dim = 4, 32

    # Mirror the module's parameter construction (deterministic). forward()
    # does not consume it -- its normalization result is discarded -- so it is
    # only built here for fidelity with the reference module.
    key = jax.random.PRNGKey(0)
    base = jax.random.normal(key, (1, z_dim), dtype=jnp.float32)
    noise_param = jnp.broadcast_to(base, (batch_size, z_dim))  # unused by forward

    seed = jnp.array([0], dtype=jnp.int32)
    out = jax.block_until_ready(noise_generator_forward(seed, batch_size, z_dim))

    assert out.shape == (batch_size, z_dim) and out.dtype == jnp.float32
    assert bool(jnp.all(jnp.isfinite(out)))

    # distributional sanity on the fresh standard-normal draw (128 samples,
    # deterministic given the seed -> loose bounds)
    m = float(jnp.mean(out))
    s = float(jnp.std(out))
    assert abs(m) < 0.7, m
    assert 0.3 < s < 1.8, s

    # different seeds -> different draws
    out2 = jax.block_until_ready(
        noise_generator_forward(jnp.array([1], dtype=jnp.int32), batch_size, z_dim))
    assert not bool(jnp.allclose(out, out2))

    print("KERNEL_OK")
</pallas_src>

<mosaic_0001>
module attributes {stable_mosaic.version = 11 : i64} {
  func.func @_randn_kernel(%arg0: i32, %arg1: memref<1xi32, #tpu.memory_space<smem>>, %arg2: memref<8x128xf32, #tpu.memory_space<vmem>>) attributes {dimension_semantics = [#tpu.dimension_semantics<parallel>], iteration_bounds = array<i64: 1>, scalar_prefetch = 1 : i64, scratch_operands = 0 : i64, tpu.core_type = #tpu.core_type<tc>, window_params = [{transform_indices = @transform_0, window_bounds = array<i64: 8, 128>}]} {
    %c8_i32 = arith.constant 8 : i32
    %0 = arith.muli %arg0, %c8_i32 : i32
    %1 = tpu.iota {dimensions = array<i32: 0>} : vector<8x128xi32>
    %2 = vector.broadcast %0 : i32 to vector<8x128xi32>
    %3 = arith.addi %1, %2 : vector<8x128xi32>
    %4 = tpu.iota {dimensions = array<i32: 1>} : vector<8x128xi32>
    %c128_i32 = arith.constant 128 : i32
    %5 = vector.broadcast %c128_i32 : i32 to vector<8x128xi32>
    %6 = arith.muli %3, %5 : vector<8x128xi32>
    %7 = arith.addi %6, %4 : vector<8x128xi32>
    %c0 = arith.constant 0 : index
    %8 = memref.load %arg1[%c0] : memref<1xi32, #tpu.memory_space<smem>>
    %c-1640531527_i32 = arith.constant -1640531527 : i32
    %9 = arith.muli %8, %c-1640531527_i32 : i32
    %c2142622505_i32 = arith.constant 2142622505 : i32
    %10 = arith.addi %9, %c2142622505_i32 : i32
    %c2_i32 = arith.constant 2 : i32
    %11 = vector.broadcast %c2_i32 : i32 to vector<8x128xi32>
    %12 = arith.muli %7, %11 : vector<8x128xi32>
    %13 = vector.broadcast %10 : i32 to vector<8x128xi32>
    %14 = arith.xori %12, %13 : vector<8x128xi32>
    %c16_i32 = arith.constant 16 : i32
    %15 = vector.broadcast %c16_i32 : i32 to vector<8x128xi32>
    %16 = arith.shrui %14, %15 : vector<8x128xi32>
    %17 = arith.xori %14, %16 : vector<8x128xi32>
    %c-2048144789_i32 = arith.constant -2048144789 : i32
    %18 = vector.broadcast %c-2048144789_i32 : i32 to vector<8x128xi32>
    %19 = arith.muli %17, %18 : vector<8x128xi32>
    %c13_i32 = arith.constant 13 : i32
    %20 = vector.broadcast %c13_i32 : i32 to vector<8x128xi32>
    %21 = arith.shrui %19, %20 : vector<8x128xi32>
    %22 = arith.xori %19, %21 : vector<8x128xi32>
    %c-1028477387_i32 = arith.constant -1028477387 : i32
    %23 = vector.broadcast %c-1028477387_i32 : i32 to vector<8x128xi32>
    %24 = arith.muli %22, %23 : vector<8x128xi32>
    %c16_i32_0 = arith.constant 16 : i32
    %25 = vector.broadcast %c16_i32_0 : i32 to vector<8x128xi32>
    %26 = arith.shrui %24, %25 : vector<8x128xi32>
    %27 = arith.xori %24, %26 : vector<8x128xi32>
    %c2_i32_1 = arith.constant 2 : i32
    %28 = vector.broadcast %c2_i32_1 : i32 to vector<8x128xi32>
    %29 = arith.muli %7, %28 : vector<8x128xi32>
    %c1_i32 = arith.constant 1 : i32
    %30 = vector.broadcast %c1_i32 : i32 to vector<8x128xi32>
    %31 = arith.addi %29, %30 : vector<8x128xi32>
    %32 = vector.broadcast %10 : i32 to vector<8x128xi32>
    %33 = arith.xori %31, %32 : vector<8x128xi32>
    %c16_i32_2 = arith.constant 16 : i32
    %34 = vector.broadcast %c16_i32_2 : i32 to vector<8x128xi32>
    %35 = arith.shrui %33, %34 : vector<8x128xi32>
    %36 = arith.xori %33, %35 : vector<8x128xi32>
    %c-2048144789_i32_3 = arith.constant -2048144789 : i32
    %37 = vector.broadcast %c-2048144789_i32_3 : i32 to vector<8x128xi32>
    %38 = arith.muli %36, %37 : vector<8x128xi32>
    %c13_i32_4 = arith.constant 13 : i32
    %39 = vector.broadcast %c13_i32_4 : i32 to vector<8x128xi32>
    %40 = arith.shrui %38, %39 : vector<8x128xi32>
    %41 = arith.xori %38, %40 : vector<8x128xi32>
    %c-1028477387_i32_5 = arith.constant -1028477387 : i32
    %42 = vector.broadcast %c-1028477387_i32_5 : i32 to vector<8x128xi32>
    %43 = arith.muli %41, %42 : vector<8x128xi32>
    %c16_i32_6 = arith.constant 16 : i32
    %44 = vector.broadcast %c16_i32_6 : i32 to vector<8x128xi32>
    %45 = arith.shrui %43, %44 : vector<8x128xi32>
    %46 = arith.xori %43, %45 : vector<8x128xi32>
    %c8_i32_7 = arith.constant 8 : i32
    %47 = vector.broadcast %c8_i32_7 : i32 to vector<8x128xi32>
    %48 = arith.shrui %27, %47 : vector<8x128xi32>
    %49 = arith.sitofp %48 : vector<8x128xi32> to vector<8x128xf32>
    %cst = arith.constant 1.000000e+00 : f32
    %50 = vector.broadcast %cst : f32 to vector<8x128xf32>
    %51 = arith.addf %49, %50 : vector<8x128xf32>
    %cst_8 = arith.constant 5.96046448E-8 : f32
    %52 = vector.broadcast %cst_8 : f32 to vector<8x128xf32>
    %53 = arith.mulf %51, %52 : vector<8x128xf32>
    %c8_i32_9 = arith.constant 8 : i32
    %54 = vector.broadcast %c8_i32_9 : i32 to vector<8x128xi32>
    %55 = arith.shrui %46, %54 : vector<8x128xi32>
    %56 = arith.sitofp %55 : vector<8x128xi32> to vector<8x128xf32>
    %cst_10 = arith.constant 5.96046448E-8 : f32
    %57 = vector.broadcast %cst_10 : f32 to vector<8x128xf32>
    %58 = arith.mulf %56, %57 : vector<8x128xf32>
    %59 = math.log %53 : vector<8x128xf32>
    %cst_11 = arith.constant -2.000000e+00 : f32
    %60 = vector.broadcast %cst_11 : f32 to vector<8x128xf32>
    %61 = arith.mulf %60, %59 : vector<8x128xf32>
    %62 = math.sqrt %61 : vector<8x128xf32>
    %cst_12 = arith.constant 6.28318548 : f32
    %63 = vector.broadcast %cst_12 : f32 to vector<8x128xf32>
    %64 = arith.mulf %63, %58 : vector<8x128xf32>
    %65 = math.cos %64 : vector<8x128xf32>
    %66 = arith.mulf %62, %65 : vector<8x128xf32>
    %c0_13 = arith.constant 0 : index
    %c0_14 = arith.constant 0 : index
    %67 = vector.load %arg2[%c0_13, %c0_14] : memref<8x128xf32, #tpu.memory_space<vmem>>, vector<8x128xf32>
    tpu.vector_store %arg2[%c0_13, %c0_14], %66 {strides = array<i32>} : memref<8x128xf32, #tpu.memory_space<vmem>>, vector<8x128xf32>,
    return
  }
  func.func @transform_0(%arg0: i32, %arg1: memref<1xi32, #tpu.memory_space<smem>>) -> (i32, i32) {
    %c0_i32 = arith.constant 0 : i32
    %c0_i32_0 = arith.constant 0 : i32
    return %arg0, %c0_i32 : i32, i32
  }
}

</mosaic_0001>

<bundles_post_ra>
// kernel: tpu_custom_call.1
= control target key start
LH: loop header
LB: loop body
LE: loop exit
PB: predicated region body
PF: predicated region fallthrough
CT: control target
= control target key end

     0   :  { %7 = vsyncpa [#allocation5], 0  ;;  %v9_v0 = vlaneseq  ;;  %v277_v39 = vmov 683565275   ;;  %v278_v41 = vmov 2475754826   ;;  %s355_s0 = inlined_call_operand.<no memory space> [shape: s32[1], index: 0, kind: input, shape index: {}]   ;;  %s356_s1 = inlined_call_operand.hbm [shape: f32[8,128], index: 1, kind: output, shape index: {}]  }
   0x1   :  { %s18_s8 = smul.u32 2654435769, %s355_s0  ;;  %v279_v43 = vmov 2131351028   ;;  %v280_v45 = vmov 2102212464  }
   0x2   :  { %v10_v1 = vshrl.u32 %v9_v0, 7  ;;  %v14_v2 = vand.u32 127, %v9_v0  ;;  %v281_v47 = vmov 920167782   ;;  %v282_v54 = vmov 1326507024  }
   0x3   :  { %s19_s9 = sadd.s32 2142622505, %s18_s8  ;;  %s284_s0 = smov [#allocation4]  }
   0x4   :  { %v15_v3 = vmul.u32 128, %v10_v1  ;;  %v21_v6 = vstv %s19_s9  ;;  %s225_s10 = sshll.u32 %s284_s0, 4  ;;  %s227_s13 = sshll.u32 %s356_s1, 4  ;;  %s226_s10 = int_to_ptr.vmem [resolvable:$true] %s225_s10  ;;  %s228_s13 = int_to_ptr.hbm [resolvable:$true] %s227_s13 }
   0x6   :  { %v16_v4 = vadd.s32 %v15_v3, %v14_v2 }
   0x8   :  { %v20_v5 = vmul.u32 2, %v16_v4 }
   0xa   :  { %v22_v7 = vxor.u32 %v21_v6, %v20_v5  ;;  %v31_v8 = vadd.s32 1, %v20_v5 }
   0xc   :  { %v32_v9 = vxor.u32 %v31_v8, %v21_v6  ;;  %v23_v18 = vshrl.u32 %v22_v7, 16 }
   0xe   :  { %v33_v10 = vshrl.u32 %v32_v9, 16  ;;  %v24_v21 = vxor.u32 %v23_v18, %v22_v7 }
  0x10   :  { %v34_v11 = vxor.u32 %v33_v10, %v32_v9  ;;  %v25_v24 = vmul.u32 2246822507, %v24_v21 }
  0x12   :  { %v35_v12 = vmul.u32 2246822507, %v34_v11  ;;  %v26_v27 = vshrl.u32 %v25_v24, 13 }
  0x14   :  { %v36_v13 = vshrl.u32 %v35_v12, 13  ;;  %v27_v31 = vxor.u32 %v26_v27, %v25_v24 }
  0x16   :  { %v37_v14 = vxor.u32 %v36_v13, %v35_v12  ;;  %v28_v34 = vmul.u32 3266489909, %v27_v31 }
  0x18   :  { %v38_v15 = vmul.u32 3266489909, %v37_v14  ;;  %v29_v49 = vshrl.u32 %v28_v34, 16 }
  0x1a   :  { %v39_v16 = vshrl.u32 %v38_v15, 16  ;;  %v30_v0 = vxor.u32 %v29_v49, %v28_v34 }
  0x1c   :  { %v40_v17 = vxor.u32 %v39_v16, %v38_v15  ;;  %v41_v13 = vshrl.u32 %v30_v0, 8 }
  0x1e   :  { %v45_v19 = vshrl.u32 %v40_v17, 8 }
  0x20   :  { %v46_v20 = vcvt.s32.f32 %v45_v19 }
  0x22   :  { %v47_v22 = vmul.f32 5.9604645e-08, %v46_v20 }
  0x24   :  { %v298_v23 = vmul.f32 6.2831855, %v47_v22 }
  0x26   :  { %v67_v25 = vand.u32 2139095040, %v298_v23  ;;  %v64_v28 = vand.u32 2147483647, %v298_v23  ;;  %vm66_vm12 = vcmp.lt.s32.totalorder %v298_v23, 0 }
  0x28   :  { %v68_v26 = vshrl.u32 %v67_v25, 23  ;;  %v71_v32 = vand.u32 8388607, %v64_v28  ;;  %v42_v25 = vcvt.s32.f32 %v41_v13  ;;  %vm342_vm13 = vcmp.le.f32.partialorder %v64_v28, 0.7853982 }
  0x2a   :  { %v236_v29 = vadd.s32 4294967169, %v68_v26  ;;  %v72_v36 = vor.u32 8388608, %v71_v32  ;;  %v43_v49 = vadd.f32 1.0, %v42_v25 }
  0x2c   :  { %v74_v30 = vadd.s32 1, %v236_v29  ;;  %v307_v56 = vshll.u32 %v72_v36, 8 }
  0x2e   :  { %vm75_vm0 = vcmp.gt.s32.totalorder %v74_v30, 0  ;;  %v113_v5 = vand.u32 65535, %v307_v56  ;;  %v114_v6 = vshrl.u32 %v307_v56, 16 }
  0x2f   :  { %v76_v33 = vsel %vm75_vm0, %v74_v30, 0 }
  0x30   :  { %v78_v35 = vand.u32 31, %v76_v33  ;;  %v304_v37 = vshrl.u32 %v76_v33, 5  ;;  %v283_v33 = vmov 0  }
  0x32   :  { %v79_v38 = vsub.s32 32, %v78_v35  ;;  %v81_v40 = vshll.u32 %v277_v39, %v78_v35  ;;  %v84_v42 = vshll.u32 %v278_v41, %v78_v35  ;;  %v87_v44 = vshll.u32 %v279_v43, %v78_v35 }
  0x33   :  { %v90_v46 = vshll.u32 %v280_v45, %v78_v35  ;;  %v93_v48 = vshll.u32 %v281_v47, %v78_v35  ;;  %vm96_vm1 = vcmp.lt.s32.totalorder %v304_v37, 1  ;;  %vm99_vm2 = vcmp.lt.s32.totalorder %v304_v37, 4 }
  0x34   :  { %v82_v50 = vshrl.u32 %v278_v41, %v79_v38  ;;  %v85_v51 = vshrl.u32 %v279_v43, %v79_v38  ;;  %v88_v52 = vshrl.u32 %v280_v45, %v79_v38  ;;  %v91_v53 = vshrl.u32 %v281_v47, %v79_v38 }
  0x35   :  { %v94_v55 = vshrl.u32 %v282_v54, %v79_v38  ;;  %vm98_vm3 = vcmp.lt.s32.totalorder %v304_v37, 3  ;;  %vm97_vm4 = vcmp.lt.s32.totalorder %v304_v37, 2  ;;  %v80_v14 = vshrl.u32 %v277_v39, %v79_v38 }
  0x36   :  { %v83_v57 = vor.u32 %v82_v50, %v81_v40  ;;  %v86_v58 = vor.u32 %v85_v51, %v84_v42  ;;  %v89_v59 = vor.u32 %v88_v52, %v87_v44  ;;  %v92_v60 = vor.u32 %v91_v53, %v90_v46 }
  0x37   :  { %v95_v61 = vor.u32 %v94_v55, %v93_v48 }
  0x38   :  { %v104_v62 = vsel %vm96_vm1, %v83_v57, %v86_v58  ;;  %v108_v63 = vsel %vm96_vm1, %v86_v58, %v89_v59  ;;  %v105_v1 = vsel %vm99_vm2, %v92_v60, 920167782  ;;  %v100_v29 = vsel %vm96_vm1, %v80_v14, %v83_v57 }
  0x39   :  { %v109_v2 = vsel %vm99_vm2, %v95_v61, 1326507024  ;;  %v106_v3 = vsel %vm98_vm3, %v89_v59, %v105_v1  ;;  %v101_v32 = vsel %vm99_vm2, %v89_v59, 2102212464  ;;  %v44_v57 = vmul.f32 5.9604645e-08, %v43_v49 }
  0x3a   :  { %v110_v4 = vsel %vm98_vm3, %v92_v60, %v109_v2  ;;  %v107_v7 = vsel %vm97_vm4, %v104_v62, %v106_v3  ;;  %v102_v43 = vsel %vm98_vm3, %v86_v58, %v101_v32  ;;  %vm207_vm3 = vweird.f32 %v298_v23 }
  0x3b   :  { %v111_v8 = vsel %vm97_vm4, %v108_v63, %v110_v4  ;;  %v137_v11 = vand.u32 65535, %v107_v7  ;;  %v138_v12 = vshrl.u32 %v107_v7, 16  ;;  %v103_v52 = vsel %vm97_vm4, %v100_v29, %v102_v43 }
  0x3c   :  { %v115_v9 = vand.u32 65535, %v111_v8  ;;  %v116_v10 = vshrl.u32 %v111_v8, 16  ;;  %v157_v59 = vmul.u32 %v307_v56, %v103_v52  ;;  %247 = vlog2.f32 %v44_v57 }
  0x3d   :  { %v139_v18 = vmul.u32 %v137_v11, %v113_v5  ;;  %v140_v19 = vmul.u32 %v138_v12, %v113_v5  ;;  %v141_v20 = vmul.u32 %v137_v11, %v114_v6  ;;  %v142_v26 = vmul.u32 %v138_v12, %v114_v6 }
  0x3e   :  { %v117_v15 = vmul.u32 %v115_v9, %v113_v5  ;;  %v118_v16 = vmul.u32 %v116_v10, %v113_v5  ;;  %v119_v17 = vmul.u32 %v115_v9, %v114_v6  ;;  %v120_v21 = vmul.u32 %v116_v10, %v114_v6 }
  0x3f   :  { %v143_v27 = vshll.u32 %v140_v19, 16  ;;  %v145_v31 = vshll.u32 %v141_v20, 16  ;;  %v144_v41 = vshrl.u32 %v140_v19, 16  ;;  %v146_v47 = vshrl.u32 %v141_v20, 16 }
  0x40   :  { %v121_v22 = vshll.u32 %v118_v16, 16  ;;  %v123_v24 = vshll.u32 %v119_v17, 16  ;;  %v122_v36 = vshrl.u32 %v118_v16, 16  ;;  %v124_v44 = vshrl.u32 %v119_v17, 16 }
  0x41   :  { %vm147_vm6 = vc.u32 %v139_v18, %v143_v27  ;;  %v149_v35 = vadd.s32 %v143_v27, %v139_v18 }
  0x42   :  { %vm125_vm5 = vc.u32 %v117_v15, %v121_v22  ;;  %v127_v30 = vadd.s32 %v121_v22, %v117_v15  ;;  %v148_v39 = vsel %vm147_vm6, 1, %v283_v33  ;;  %v248_v0 = vpop.eup %247 }
  0x43   :  { %v126_v34 = vsel %vm125_vm5, 1, %v283_v33  ;;  %v150_v42 = vadd.s32 %v148_v39, %v142_v26  ;;  %vm151_vm8 = vc.u32 %v149_v35, %v145_v31  ;;  %v153_v51 = vadd.s32 %v149_v35, %v145_v31 }
  0x44   :  { %v128_v38 = vadd.s32 %v126_v34, %v120_v21  ;;  %vm129_vm7 = vc.u32 %v127_v30, %v123_v24  ;;  %v152_v46 = vsel %vm151_vm8, 1, %v283_v33  ;;  %v49_v3 = vmul.f32 0.6931472, %v248_v0 }
  0x45   :  { %v130_v40 = vsel %vm129_vm7, 1, %v283_v33  ;;  %v154_v48 = vadd.s32 %v152_v46, %v150_v42 }
  0x46   :  { %v132_v45 = vadd.s32 %v130_v40, %v128_v38  ;;  %v50_v5 = vmul.f32 -2.0, %v49_v3 }
  0x47   :  { %v155_v53 = vadd.s32 %v154_v48, %v144_v41 }
  0x48   :  { %v133_v50 = vadd.s32 %v132_v45, %v122_v36  ;;  %249 = vrsqrt.f32 %v50_v5  ;;  %vm58_vm14 = vcmp.eq.f32.partialorder %v50_v5, inf  ;;  %vm60_vm0 = vcmp.eq.f32.partialorder %v50_v5, 0.0 }
  0x49   :  { %v156_v55 = vadd.s32 %v155_v53, %v146_v47 }
  0x4a   :  { %v134_v54 = vadd.s32 %v133_v50, %v124_v44  ;;  %v61_v50 = vand.u32 2147483648, %v50_v5 }
  0x4b   :  { %v160_v60 = vadd.s32 1, %v156_v55 }
  0x4c   :  { %vm159_vm9 = vc.u32 %v134_v54, %v153_v51  ;;  %v158_v8 = vadd.s32 %v153_v51, %v134_v54 }
  0x4d   :  { %v161_v58 = vsel %vm159_vm9, %v160_v60, %v156_v55 }
  0x4e   :  { %v162_v61 = vadd.s32 %v161_v58, %v157_v59  ;;  %v250_v14 = vpop.eup %249 }
  0x4f   :  { %v52_v19 = vmul.f32 %v250_v14, %v50_v5 }
  0x50   :  { %v163_v62 = vadd.s32 536870912, %v162_v61 }
  0x51   :  { %v53_v22 = vmul.f32 %v250_v14, %v52_v19 }
  0x52   :  { %v164_v63 = vshrl.u32 %v163_v62, 30 }
  0x53   :  { %v54_v27 = vmul.f32 0.5, %v53_v22 }
  0x54   :  { %v165_v1 = vshll.u32 %v164_v63, 30  ;;  %v188_v29 = vsub.s32 4, %v164_v63 }
  0x55   :  { %v55_v34 = vsub.f32 1.5, %v54_v27 }
  0x56   :  { %v166_v2 = vsub.s32 %v162_v61, %v165_v1  ;;  %v189_v35 = vsel %vm66_vm12, %v188_v29, %v164_v63 }
  0x57   :  { %v191_v28 = vsel %vm342_vm13, 0, %v189_v35  ;;  %v56_v41 = vmul.f32 %v250_v14, %v55_v34 }
  0x58   :  { %vm167_vm10 = vcmp.lt.s32.totalorder %v166_v2, 0  ;;  %v168_v37 = vsub.s32 0, %v166_v2  ;;  %v208_v44 = vand.u32 3, %v191_v28 }
  0x59   :  { %v57_v47 = vmul.f32 %v56_v41, %v50_v5 }
  0x5a   :  { %v169_v4 = vsel %vm167_vm10, %v168_v37, %v166_v2  ;;  %vm213_vm15 = vcmp.eq.s32.totalorder %v208_v44, 2  ;;  %vm210_vm1 = vcmp.eq.s32.totalorder %v208_v44, 0  ;;  %vm209_vm2 = vcmp.lt.s32.totalorder %v208_v44, 2 }
  0x5b   :  { %v170_v6 = vclz %v169_v4  ;;  %v59_v53 = vsel %vm58_vm14, %v50_v5, %v57_v47 }
  0x5c   :  { %v62_v57 = vsel %vm60_vm0, %v61_v50, %v59_v53 }
  0x5d   :  { %v237_v7 = vadd.s32 4294967294, %v170_v6 }
  0x5f   :  { %vm238_vm11 = vcmp.lt.s32.totalorder %v237_v7, 0 }
  0x60   :  { %v173_v56 = vsel %vm238_vm11, 0, %v237_v7 }
  0x61   :  { %v174_v9 = vsub.s32 32, %v173_v56  ;;  %v175_v10 = vshll.u32 %v166_v2, %v173_v56  ;;  %v178_v11 = vsub.s32 4294967266, %v173_v56 }
  0x63   :  { %v176_v12 = vshrl.u32 %v158_v8, %v174_v9  ;;  %v179_v13 = vadd.s32 127, %v178_v11 }
  0x65   :  { %v177_v15 = vor.u32 %v176_v12, %v175_v10  ;;  %v180_v16 = vshll.u32 %v179_v13, 23 }
  0x67   :  { %v181_v17 = vor.u32 4788187, %v180_v16  ;;  %v184_v18 = vcvt.s32.f32 %v177_v15 }
  0x69   :  { %v182_v20 = vand.u32 2147483647, %v181_v17 }
  0x6b   :  { %v185_v21 = vmul.f32 %v184_v18, %v182_v20 }
  0x6d   :  { %v186_v25 = vxor.u32 2147483648, %v185_v21 }
  0x6f   :  { %v187_v26 = vsel %vm66_vm12, %v186_v25, %v185_v21 }
  0x70   :  { %v190_v30 = vsel %vm342_vm13, %v298_v23, %v187_v26 }
  0x71   :  { %v192_v31 = vmul.f32 %v190_v30, %v190_v30 }
  0x73   :  { %v193_v32 = vmul.f32 -0.001358992, %v192_v31  ;;  %v200_v33 = vmul.f32 -0.00019511016, %v192_v31 }
  0x75   :  { %v194_v36 = vadd.f32 0.041655596, %v193_v32  ;;  %v201_v38 = vadd.f32 0.008332121, %v200_v33 }
  0x77   :  { %v195_v39 = vmul.f32 %v194_v36, %v192_v31  ;;  %v202_v40 = vmul.f32 %v201_v38, %v192_v31 }
  0x79   :  { %v196_v42 = vadd.f32 -0.4999988, %v195_v39  ;;  %v203_v43 = vadd.f32 -0.16666654, %v202_v40 }
  0x7b   :  { %v197_v45 = vmul.f32 %v196_v42, %v192_v31  ;;  %v204_v46 = vmul.f32 %v203_v43, %v192_v31 }
  0x7d   :  { %v198_v48 = vadd.f32 1.0, %v197_v45  ;;  %v205_v49 = vadd.f32 1.0, %v204_v46 }
  0x7f   :  { %v206_v51 = vmul.f32 %v205_v49, %v190_v30  ;;  %v214_v52 = vxor.u32 2147483648, %v198_v48 }
  0x81   :  { %v211_v54 = vxor.u32 2147483648, %v206_v51  ;;  %v215_v55 = vsel %vm213_vm15, %v214_v52, %v206_v51 }
  0x83   :  { %v212_v59 = vsel %vm210_vm1, %v198_v48, %v211_v54 }
  0x84   :  { %v216_v60 = vsel %vm209_vm2, %v212_v59, %v215_v55 }
  0x85   :  { %v217_v58 = vsel %vm207_vm3, nan, %v216_v60 }
  0x86   :  { %v218_v61 = vmul.f32 %v217_v58, %v62_v57 }
  0x88   :  { %219 = vst [vmem:[#allocation4] sm:$0xff] %v218_v61 }
  0x89   :  { %230 = dma.vmem_to_hbm [thread:$0]  %s226_s10, 128, %s228_s13, [#allocation5]  }
  0x8a   :  { %275 = dma.done.wait [#allocation5], 128  }
  0x8b   :  { %276 = vsyncadd [#allocation5], 4294967168 }
  0x8c   :  { %235 = vsyncpa [#allocation5], 1 }

</bundles_post_ra>
